<compile_context>
chip_gen: v7x
topology: tpu7x:2x2x1
jax: 0.10.0
libtpu: 0.0.40
codegen_flags: <defaults>
</compile_context>

<pallas_src>
import numpy as np
import jax
import jax.numpy as jnp
from jax.experimental import pallas as pl
from jax.experimental.pallas import tpu as pltpu

NUM_CLASSES = 16          # small synthetic config (module default is 80)
BOX_CHANNELS = 16         # >= 16 so both the box-loss and DFL branches are exercised
BOX_WEIGHT = 7.5
CLS_WEIGHT = 0.5
DFL_WEIGHT = 1.5


def _round_up(x, m):
    return ((x + m - 1) // m) * m


def _make_fused_kernel(num_classes):
    """Kernel body for a 1-D grid over (scale, image) pairs.

    Lane layout of each [ROWS, LANES] slab (LANES = round_up(3C + 24, 128)):
      [0     , C    )  cls_pred_pos                 (valid rows: num_pos)
      [C     , 2C   )  cls_target_pos               (valid rows: num_pos)
      [2C    , 3C   )  cls_pred_neg                 (valid rows: num_neg)
      [3C    , 3C+4 )  box_pred   (xc, yc, w, h)    (valid rows: nb)
      [3C+4  , 3C+8 )  box_target                   (valid rows: nb)
      [3C+8  ]         output lane for per-row (1 - IoU)
      [3C+12 , 3C+24)  dfl slice pred_box[:, 4:16]  (valid rows: num_pos)
      rest             zero padding
    The weight slab holds mask * loss_weight / (count * num_scale) per element, so
    masked means become a single multiply + elementwise accumulate.
    """
    C = num_classes
    off_pos, off_tgt, off_neg = 0, C, 2 * C
    off_bp, off_bt, off_iou, off_dfl = 3 * C, 3 * C + 4, 3 * C + 8, 3 * C + 12
    cls_end, box_end, dfl_end = 3 * C, 3 * C + 12, 3 * C + 24

    def kernel(slab_ref, w_ref, out_ref, acc_ref):
        pid = pl.program_id(0)

        @pl.when(pid == 0)
        def _init():
            acc_ref[...] = jnp.zeros_like(acc_ref)

        s = slab_ref[0].astype(jnp.float32)     # [ROWS, LANES]; keep math in f32 (v5e)
        w = w_ref[0]                            # [ROWS, LANES] f32

        # --- classification BCE-with-logits, positive samples ---
        x = s[:, off_pos:off_pos + C]
        z = s[:, off_tgt:off_tgt + C]
        bce_pos = jnp.maximum(x, 0.0) - x * z + jnp.log1p(jnp.exp(-jnp.abs(x)))
        acc_ref[:, off_pos:off_pos + C] += bce_pos * w[:, off_pos:off_pos + C]

        # --- classification BCE, negative samples (target == 0  ->  softplus) ---
        xn = s[:, off_neg:off_neg + C]
        bce_neg = jnp.maximum(xn, 0.0) + jnp.log1p(jnp.exp(-jnp.abs(xn)))
        acc_ref[:, off_neg:off_neg + C] += bce_neg * w[:, off_neg:off_neg + C]

        # --- box regression: MSE ---
        bp = s[:, off_bp:off_bp + 4]            # (xc, yc, w, h)
        bt = s[:, off_bt:off_bt + 4]
        acc_ref[:, off_bp:off_bp + 4] += (bp - bt) ** 2 * w[:, off_bp:off_bp + 4]

        # --- box regression: IoU loss (padded rows are weight-masked to zero) ---
        b1x1 = bp[:, 0:1] - bp[:, 2:3] * 0.5
        b1y1 = bp[:, 1:2] - bp[:, 3:4] * 0.5
        b1x2 = bp[:, 0:1] + bp[:, 2:3] * 0.5
        b1y2 = bp[:, 1:2] + bp[:, 3:4] * 0.5
        b2x1 = bt[:, 0:1] - bt[:, 2:3] * 0.5
        b2y1 = bt[:, 1:2] - bt[:, 3:4] * 0.5
        b2x2 = bt[:, 0:1] + bt[:, 2:3] * 0.5
        b2y2 = bt[:, 1:2] + bt[:, 3:4] * 0.5
        inter_w = jnp.maximum(jnp.minimum(b1x2, b2x2) - jnp.maximum(b1x1, b2x1), 0.0)
        inter_h = jnp.maximum(jnp.minimum(b1y2, b2y2) - jnp.maximum(b1y1, b2y1), 0.0)
        inter = inter_w * inter_h
        area1 = (b1x2 - b1x1) * (b1y2 - b1y1)
        area2 = (b2x2 - b2x1) * (b2y2 - b2y1)
        union = area1 + area2 - inter + 1e-7
        one_minus_iou = 1.0 - inter / union      # [ROWS, 1]
        acc_ref[:, off_iou:off_iou + 1] += one_minus_iou * w[:, off_iou:off_iou + 1]

        # --- DFL proxy: (pred_box[:, 4:16] - 0.5)^2  (x2.0 folded into the weights) ---
        dfl = s[:, off_dfl:off_dfl + 12]
        acc_ref[:, off_dfl:off_dfl + 12] += (dfl - 0.5) ** 2 * w[:, off_dfl:off_dfl + 12]

        # --- finalize: one cross-lane reduce per loss, only on the last grid step ---
        @pl.when(pid == pl.num_programs(0) - 1)
        def _finalize():
            a = acc_ref[...]
            cls_l = jnp.sum(a[:, 0:cls_end])
            box_l = jnp.sum(a[:, cls_end:box_end])
            dfl_l = jnp.sum(a[:, box_end:dfl_end])
            out_ref[0, 0] = cls_l + box_l + dfl_l
            out_ref[0, 1] = box_l
            out_ref[0, 2] = cls_l
            out_ref[0, 3] = dfl_l

    return kernel


def _fused_losses(slabs, weights, num_classes):
    """slabs, weights: [num_pairs, ROWS, LANES] f32 -> [4] weighted (total, box, cls, dfl)."""
    P, R, L = slabs.shape
    kernel = _make_fused_kernel(num_classes)
    out = pl.pallas_call(
        kernel,
        out_shape=jax.ShapeDtypeStruct((1, 4), jnp.float32),
        grid=(P,),
        in_specs=[
            pl.BlockSpec((1, R, L), lambda i: (i, 0, 0)),
            pl.BlockSpec((1, R, L), lambda i: (i, 0, 0)),
        ],
        out_specs=pl.BlockSpec((1, 4), lambda i: (0, 0),
                               memory_space=pltpu.MemorySpace.SMEM),
        scratch_shapes=[pltpu.VMEM((R, L), jnp.float32)],
        # The pair axis accumulates into a shared lane accumulator -> reduction axis.
        # (For real YOLO sizes keep the per-step slab to a few MiB and raise
        #  vmem_limit_bytes explicitly; v7x only has 64 MiB of VMEM.)
        compiler_params=pltpu.CompilerParams(dimension_semantics=("arbitrary",)),
    )(slabs, weights)
    return out[0]


def yolo_loss(predictions, targets, num_classes=NUM_CLASSES, seed=0):
    """predictions: list of NCHW (or [bs, anchors, ch]) arrays (3 scales);
    targets: list (per image) of [num_boxes, 5] arrays (class_id, xc, yc, w, h)."""
    num_scale = len(predictions)
    inv_ns = 1.0 / num_scale
    rng = np.random.default_rng(seed)
    C = num_classes
    lanes = _round_up(3 * C + 24, 128)

    # Proxy branches of the reference module (2-D / unexpected rank) -- plain JAX.
    box_extra = jnp.float32(0.0)
    cls_extra = jnp.float32(0.0)
    dfl_extra = jnp.float32(0.0)

    pairs = []   # gathered rows + metadata for every (scale, image) pair
    for pred in predictions:
        if pred.ndim == 4:
            bs, channels, h, w_ = pred.shape
            pred3 = jnp.transpose(pred, (0, 2, 3, 1)).reshape(bs, h * w_, channels)
        elif pred.ndim == 3:
            pred3 = pred
            bs = pred.shape[0]
        elif pred.ndim == 2:
            m = jnp.mean(jnp.abs(pred))
            box_extra = box_extra + m * 0.5 * inv_ns
            cls_extra = cls_extra + m * 2.0 * inv_ns
            dfl_extra = dfl_extra + m * 0.7 * inv_ns
            continue
        else:
            m = jnp.mean(jnp.abs(pred)) * 3.0
            box_extra = box_extra + m * 0.5 * inv_ns
            cls_extra = cls_extra + m * 2.0 * inv_ns
            dfl_extra = dfl_extra + m * 0.5 * inv_ns
            continue

        pred_cls = pred3[..., -C:]
        pred_box = pred3[..., :-C]
        num_anchors = pred3.shape[1]
        box_ch = pred_box.shape[2]

        for j in range(bs):
            if j >= len(targets):
                continue
            img_targets = targets[j]
            num_targets = int(img_targets.shape[0])
            if num_targets == 0:
                continue
            gt_cls = img_targets[:, 0].astype(jnp.int32)
            gt_box = img_targets[:, 1:5]
            # one-hot; class_id >= num_classes -> all-zero row (matches the torch loop)
            cls_target = jax.nn.one_hot(gt_cls, C, dtype=jnp.float32)

            # TODO(synk): torch.randperm / torch.randint sampling has no exact Pallas
            # equivalent; replaced with a deterministic numpy stream whose indices are
            # trace-time constants (enables static gathers and static packing/masking).
            num_pos = min(num_anchors, num_targets * 3)
            num_neg = min(num_anchors, num_targets * 6)
            pos_idx = rng.permutation(num_anchors)[:num_pos]
            tgt_idx = rng.integers(0, num_targets, size=num_pos)
            neg_idx = rng.permutation(num_anchors)[:num_neg]

            # TODO(synk): sampled-row gathers stay host-side (constant-index XLA
            # gathers); an in-kernel DMA gather via scalar prefetch would require
            # per-scale anchor padding and is left out.
            cls_pos = pred_cls[j][pos_idx]
            cls_tgt = cls_target[tgt_idx]
            cls_neg = pred_cls[j][neg_idx]

            nb = min(num_targets, num_pos)
            box_pred = pred_box[j][pos_idx[:nb]][:, :4] if box_ch >= 4 else None
            box_tgt = gt_box[:nb] if box_ch >= 4 else None
            dfl = pred_box[j][pos_idx][:, 4:16] if box_ch >= 16 else None

            pairs.append(dict(cls_pos=cls_pos, cls_tgt=cls_tgt, cls_neg=cls_neg,
                              box_pred=box_pred, box_tgt=box_tgt, dfl=dfl,
                              num_pos=num_pos, num_neg=num_neg, nb=nb,
                              box_ch=box_ch))

    if pairs:
        rows = _round_up(max(max(p["num_pos"], p["num_neg"]) for p in pairs), 8)

        def pad_rows(a, width):
            if a is None:
                return jnp.zeros((rows, width), jnp.float32)
            a = a.astype(jnp.float32)
            return jnp.pad(a, ((0, rows - a.shape[0]), (0, 0)))

        slab_list, wt_list = [], []
        for p in pairs:
            slab = jnp.concatenate([
                pad_rows(p["cls_pos"], C), pad_rows(p["cls_tgt"], C),
                pad_rows(p["cls_neg"], C),
                pad_rows(p["box_pred"], 4), pad_rows(p["box_tgt"], 4),
                jnp.zeros((rows, 4), jnp.float32),        # IoU output lane + spare
                pad_rows(p["dfl"], 12),
                jnp.zeros((rows, lanes - (3 * C + 24)), jnp.float32),
            ], axis=1)                                    # [rows, lanes]
            slab_list.append(slab)

            # weight slab = mask * loss_weight / (count * num_scale); trace-time const
            w = np.zeros((rows, lanes), np.float32)
            w[:p["num_pos"], 0:C] = CLS_WEIGHT * inv_ns / (p["num_pos"] * C)
            w[:p["num_neg"], 2 * C:3 * C] = CLS_WEIGHT * 0.5 * inv_ns / (p["num_neg"] * C)
            if p["box_ch"] >= 4:
                w[:p["nb"], 3 * C:3 * C + 4] = BOX_WEIGHT * inv_ns / (p["nb"] * 4)
                w[:p["nb"], 3 * C + 8] = BOX_WEIGHT * inv_ns / p["nb"]
            if p["box_ch"] >= 16:
                w[:p["num_pos"], 3 * C + 12:3 * C + 24] = (
                    DFL_WEIGHT * 2.0 * inv_ns / (p["num_pos"] * 12))
            wt_list.append(w)

        slabs = jnp.stack(slab_list)                  # [num_pairs, rows, lanes]
        weights = jnp.asarray(np.stack(wt_list))      # [num_pairs, rows, lanes]
        fused = _fused_losses(slabs, weights, C)      # weighted (total, box, cls, dfl)
        box_loss = fused[1]
        cls_loss = fused[2]
        dfl_loss = fused[3]
    else:
        box_loss = cls_loss = dfl_loss = jnp.float32(0.0)

    box_loss = box_loss + box_extra * BOX_WEIGHT
    cls_loss = cls_loss + cls_extra * CLS_WEIGHT
    dfl_loss = dfl_loss + dfl_extra * DFL_WEIGHT
    total_loss = box_loss + cls_loss + dfl_loss
    return total_loss, box_loss, cls_loss, dfl_loss


if __name__ == "__main__":
    key = jax.random.PRNGKey(0)
    bs = 2
    channels = BOX_CHANNELS + NUM_CLASSES   # 32
    spatial = [8, 4, 2]                     # 3 detection scales

    k0, k1, k2, k3 = jax.random.split(key, 4)
    predictions = [
        jax.random.normal(k, (bs, channels, s, s), dtype=jnp.float32)
        for k, s in zip((k0, k1, k2), spatial)
    ]

    def make_targets(k, n):
        kc, kb = jax.random.split(k)
        cls_ids = jax.random.randint(kc, (n, 1), 0, NUM_CLASSES).astype(jnp.float32)
        boxes = jax.random.uniform(kb, (n, 4), minval=0.05, maxval=0.95,
                                   dtype=jnp.float32)
        return jnp.concatenate([cls_ids, boxes], axis=1)

    kt0, kt1 = jax.random.split(k3)
    targets = [make_targets(kt0, 3), make_targets(kt1, 2)]

    total, box_l, cls_l, dfl_l = yolo_loss(predictions, targets)
    jax.block_until_ready(total)
    print("KERNEL_OK")
</pallas_src>

<mosaic_0001>
module attributes {stable_mosaic.version = 11 : i64} {
  func.func @kernel(%arg0: i32, %arg1: memref<1x24x128xf32, #tpu.memory_space<vmem>>, %arg2: memref<1x24x128xf32, #tpu.memory_space<vmem>>, %arg3: memref<1x4xf32, #tpu.memory_space<smem>>, %arg4: memref<24x128xf32, #tpu.memory_space<vmem>>) attributes {dimension_semantics = [#tpu.dimension_semantics<arbitrary>], iteration_bounds = array<i64: 6>, scalar_prefetch = 0 : i64, scratch_operands = 1 : i64, tpu.core_type = #tpu.core_type<tc>, window_params = [{transform_indices = @transform_0, window_bounds = array<i64: 1, 24, 128>}, {transform_indices = @transform_1, window_bounds = array<i64: 1, 24, 128>}, {transform_indices = @transform_2, window_bounds = array<i64: 1, 4>}]} {
    %c0_i32 = arith.constant 0 : i32
    %0 = arith.cmpi eq, %arg0, %c0_i32 : i32
    %1 = arith.extui %0 : i1 to i32
    %c0_i32_0 = arith.constant 0 : i32
    %2 = arith.cmpi ne, %1, %c0_i32_0 : i32
    scf.if %2 {
      %cst_39 = arith.constant 0.000000e+00 : f32
      %128 = vector.broadcast %cst_39 : f32 to vector<24x128xf32>
      %c0_40 = arith.constant 0 : index
      %c0_41 = arith.constant 0 : index
      %129 = vector.load %arg4[%c0_40, %c0_41] : memref<24x128xf32, #tpu.memory_space<vmem>>, vector<24x128xf32>
      tpu.vector_store %arg4[%c0_40, %c0_41], %128 {strides = array<i32>} : memref<24x128xf32, #tpu.memory_space<vmem>>, vector<24x128xf32>,
    } else {
    }
    %c0 = arith.constant 0 : index
    %c0_1 = arith.constant 0 : index
    %c0_2 = arith.constant 0 : index
    %3 = vector.load %arg1[%c0, %c0_1, %c0_2] : memref<1x24x128xf32, #tpu.memory_space<vmem>>, vector<1x24x128xf32>
    %4 = vector.shape_cast %3 : vector<1x24x128xf32> to vector<24x128xf32>
    %c0_3 = arith.constant 0 : index
    %c0_4 = arith.constant 0 : index
    %c0_5 = arith.constant 0 : index
    %5 = vector.load %arg2[%c0_3, %c0_4, %c0_5] : memref<1x24x128xf32, #tpu.memory_space<vmem>>, vector<1x24x128xf32>
    %6 = vector.shape_cast %5 : vector<1x24x128xf32> to vector<24x128xf32>
    %7 = vector.extract_strided_slice %4 {offsets = [0, 0], sizes = [24, 16], strides = [1, 1]} : vector<24x128xf32> to vector<24x16xf32>
    %8 = vector.extract_strided_slice %4 {offsets = [0, 16], sizes = [24, 16], strides = [1, 1]} : vector<24x128xf32> to vector<24x16xf32>
    %cst = arith.constant 0.000000e+00 : f32
    %9 = vector.broadcast %cst : f32 to vector<24x16xf32>
    %10 = arith.maximumf %7, %9 : vector<24x16xf32>
    %11 = arith.mulf %7, %8 : vector<24x16xf32>
    %12 = arith.subf %10, %11 : vector<24x16xf32>
    %13 = math.absf %7 : vector<24x16xf32>
    %cst_6 = arith.constant 0.000000e+00 : f32
    %14 = vector.broadcast %cst_6 : f32 to vector<24x16xf32>
    %15 = arith.subf %14, %13 : vector<24x16xf32>
    %16 = math.exp %15 : vector<24x16xf32>
    %17 = math.log1p %16 : vector<24x16xf32>
    %18 = arith.addf %12, %17 : vector<24x16xf32>
    %c0_7 = arith.constant 0 : index
    %c0_8 = arith.constant 0 : index
    %19 = vector.load %arg4[%c0_7, %c0_8] : memref<24x128xf32, #tpu.memory_space<vmem>>, vector<24x16xf32>
    %20 = vector.extract_strided_slice %6 {offsets = [0, 0], sizes = [24, 16], strides = [1, 1]} : vector<24x128xf32> to vector<24x16xf32>
    %21 = arith.mulf %18, %20 : vector<24x16xf32>
    %22 = arith.addf %19, %21 : vector<24x16xf32>
    %c0_9 = arith.constant 0 : index
    %c0_10 = arith.constant 0 : index
    %23 = vector.load %arg4[%c0_9, %c0_10] : memref<24x128xf32, #tpu.memory_space<vmem>>, vector<24x16xf32>
    tpu.vector_store %arg4[%c0_9, %c0_10], %22 {strides = array<i32>} : memref<24x128xf32, #tpu.memory_space<vmem>>, vector<24x16xf32>,
    %24 = vector.extract_strided_slice %4 {offsets = [0, 32], sizes = [24, 16], strides = [1, 1]} : vector<24x128xf32> to vector<24x16xf32>
    %cst_11 = arith.constant 0.000000e+00 : f32
    %25 = vector.broadcast %cst_11 : f32 to vector<24x16xf32>
    %26 = arith.maximumf %24, %25 : vector<24x16xf32>
    %27 = math.absf %24 : vector<24x16xf32>
    %cst_12 = arith.constant 0.000000e+00 : f32
    %28 = vector.broadcast %cst_12 : f32 to vector<24x16xf32>
    %29 = arith.subf %28, %27 : vector<24x16xf32>
    %30 = math.exp %29 : vector<24x16xf32>
    %31 = math.log1p %30 : vector<24x16xf32>
    %32 = arith.addf %26, %31 : vector<24x16xf32>
    %c0_13 = arith.constant 0 : index
    %c32 = arith.constant 32 : index
    %33 = vector.load %arg4[%c0_13, %c32] : memref<24x128xf32, #tpu.memory_space<vmem>>, vector<24x16xf32>
    %34 = vector.extract_strided_slice %6 {offsets = [0, 32], sizes = [24, 16], strides = [1, 1]} : vector<24x128xf32> to vector<24x16xf32>
    %35 = arith.mulf %32, %34 : vector<24x16xf32>
    %36 = arith.addf %33, %35 : vector<24x16xf32>
    %c0_14 = arith.constant 0 : index
    %c32_15 = arith.constant 32 : index
    %37 = vector.load %arg4[%c0_14, %c32_15] : memref<24x128xf32, #tpu.memory_space<vmem>>, vector<24x16xf32>
    tpu.vector_store %arg4[%c0_14, %c32_15], %36 {strides = array<i32>} : memref<24x128xf32, #tpu.memory_space<vmem>>, vector<24x16xf32>,
    %38 = vector.extract_strided_slice %4 {offsets = [0, 48], sizes = [24, 4], strides = [1, 1]} : vector<24x128xf32> to vector<24x4xf32>
    %39 = vector.extract_strided_slice %4 {offsets = [0, 52], sizes = [24, 4], strides = [1, 1]} : vector<24x128xf32> to vector<24x4xf32>
    %c0_16 = arith.constant 0 : index
    %c48 = arith.constant 48 : index
    %40 = vector.load %arg4[%c0_16, %c48] : memref<24x128xf32, #tpu.memory_space<vmem>>, vector<24x4xf32>
    %41 = arith.subf %38, %39 : vector<24x4xf32>
    %42 = arith.mulf %41, %41 : vector<24x4xf32>
    %43 = vector.extract_strided_slice %6 {offsets = [0, 48], sizes = [24, 4], strides = [1, 1]} : vector<24x128xf32> to vector<24x4xf32>
    %44 = arith.mulf %42, %43 : vector<24x4xf32>
    %45 = arith.addf %40, %44 : vector<24x4xf32>
    %c0_17 = arith.constant 0 : index
    %c48_18 = arith.constant 48 : index
    %46 = vector.load %arg4[%c0_17, %c48_18] : memref<24x128xf32, #tpu.memory_space<vmem>>, vector<24x4xf32>
    tpu.vector_store %arg4[%c0_17, %c48_18], %45 {strides = array<i32>} : memref<24x128xf32, #tpu.memory_space<vmem>>, vector<24x4xf32>,
    %47 = vector.extract_strided_slice %38 {offsets = [0, 0], sizes = [24, 1], strides = [1, 1]} : vector<24x4xf32> to vector<24x1xf32>
    %48 = vector.extract_strided_slice %38 {offsets = [0, 2], sizes = [24, 1], strides = [1, 1]} : vector<24x4xf32> to vector<24x1xf32>
    %cst_19 = arith.constant 5.000000e-01 : f32
    %49 = vector.broadcast %cst_19 : f32 to vector<24x1xf32>
    %50 = arith.mulf %48, %49 : vector<24x1xf32>
    %51 = arith.subf %47, %50 : vector<24x1xf32>
    %52 = vector.extract_strided_slice %38 {offsets = [0, 1], sizes = [24, 1], strides = [1, 1]} : vector<24x4xf32> to vector<24x1xf32>
    %53 = vector.extract_strided_slice %38 {offsets = [0, 3], sizes = [24, 1], strides = [1, 1]} : vector<24x4xf32> to vector<24x1xf32>
    %cst_20 = arith.constant 5.000000e-01 : f32
    %54 = vector.broadcast %cst_20 : f32 to vector<24x1xf32>
    %55 = arith.mulf %53, %54 : vector<24x1xf32>
    %56 = arith.subf %52, %55 : vector<24x1xf32>
    %57 = vector.extract_strided_slice %38 {offsets = [0, 0], sizes = [24, 1], strides = [1, 1]} : vector<24x4xf32> to vector<24x1xf32>
    %58 = vector.extract_strided_slice %38 {offsets = [0, 2], sizes = [24, 1], strides = [1, 1]} : vector<24x4xf32> to vector<24x1xf32>
    %cst_21 = arith.constant 5.000000e-01 : f32
    %59 = vector.broadcast %cst_21 : f32 to vector<24x1xf32>
    %60 = arith.mulf %58, %59 : vector<24x1xf32>
    %61 = arith.addf %57, %60 : vector<24x1xf32>
    %62 = vector.extract_strided_slice %38 {offsets = [0, 1], sizes = [24, 1], strides = [1, 1]} : vector<24x4xf32> to vector<24x1xf32>
    %63 = vector.extract_strided_slice %38 {offsets = [0, 3], sizes = [24, 1], strides = [1, 1]} : vector<24x4xf32> to vector<24x1xf32>
    %cst_22 = arith.constant 5.000000e-01 : f32
    %64 = vector.broadcast %cst_22 : f32 to vector<24x1xf32>
    %65 = arith.mulf %63, %64 : vector<24x1xf32>
    %66 = arith.addf %62, %65 : vector<24x1xf32>
    %67 = vector.extract_strided_slice %39 {offsets = [0, 0], sizes = [24, 1], strides = [1, 1]} : vector<24x4xf32> to vector<24x1xf32>
    %68 = vector.extract_strided_slice %39 {offsets = [0, 2], sizes = [24, 1], strides = [1, 1]} : vector<24x4xf32> to vector<24x1xf32>
    %cst_23 = arith.constant 5.000000e-01 : f32
    %69 = vector.broadcast %cst_23 : f32 to vector<24x1xf32>
    %70 = arith.mulf %68, %69 : vector<24x1xf32>
    %71 = arith.subf %67, %70 : vector<24x1xf32>
    %72 = vector.extract_strided_slice %39 {offsets = [0, 1], sizes = [24, 1], strides = [1, 1]} : vector<24x4xf32> to vector<24x1xf32>
    %73 = vector.extract_strided_slice %39 {offsets = [0, 3], sizes = [24, 1], strides = [1, 1]} : vector<24x4xf32> to vector<24x1xf32>
    %cst_24 = arith.constant 5.000000e-01 : f32
    %74 = vector.broadcast %cst_24 : f32 to vector<24x1xf32>
    %75 = arith.mulf %73, %74 : vector<24x1xf32>
    %76 = arith.subf %72, %75 : vector<24x1xf32>
    %77 = vector.extract_strided_slice %39 {offsets = [0, 0], sizes = [24, 1], strides = [1, 1]} : vector<24x4xf32> to vector<24x1xf32>
    %78 = vector.extract_strided_slice %39 {offsets = [0, 2], sizes = [24, 1], strides = [1, 1]} : vector<24x4xf32> to vector<24x1xf32>
    %cst_25 = arith.constant 5.000000e-01 : f32
    %79 = vector.broadcast %cst_25 : f32 to vector<24x1xf32>
    %80 = arith.mulf %78, %79 : vector<24x1xf32>
    %81 = arith.addf %77, %80 : vector<24x1xf32>
    %82 = vector.extract_strided_slice %39 {offsets = [0, 1], sizes = [24, 1], strides = [1, 1]} : vector<24x4xf32> to vector<24x1xf32>
    %83 = vector.extract_strided_slice %39 {offsets = [0, 3], sizes = [24, 1], strides = [1, 1]} : vector<24x4xf32> to vector<24x1xf32>
    %cst_26 = arith.constant 5.000000e-01 : f32
    %84 = vector.broadcast %cst_26 : f32 to vector<24x1xf32>
    %85 = arith.mulf %83, %84 : vector<24x1xf32>
    %86 = arith.addf %82, %85 : vector<24x1xf32>
    %87 = arith.minimumf %61, %81 : vector<24x1xf32>
    %88 = arith.maximumf %51, %71 : vector<24x1xf32>
    %89 = arith.subf %87, %88 : vector<24x1xf32>
    %cst_27 = arith.constant 0.000000e+00 : f32
    %90 = vector.broadcast %cst_27 : f32 to vector<24x1xf32>
    %91 = arith.maximumf %89, %90 : vector<24x1xf32>
    %92 = arith.minimumf %66, %86 : vector<24x1xf32>
    %93 = arith.maximumf %56, %76 : vector<24x1xf32>
    %94 = arith.subf %92, %93 : vector<24x1xf32>
    %cst_28 = arith.constant 0.000000e+00 : f32
    %95 = vector.broadcast %cst_28 : f32 to vector<24x1xf32>
    %96 = arith.maximumf %94, %95 : vector<24x1xf32>
    %97 = arith.mulf %91, %96 : vector<24x1xf32>
    %98 = arith.subf %61, %51 : vector<24x1xf32>
    %99 = arith.subf %66, %56 : vector<24x1xf32>
    %100 = arith.mulf %98, %99 : vector<24x1xf32>
    %101 = arith.subf %81, %71 : vector<24x1xf32>
    %102 = arith.subf %86, %76 : vector<24x1xf32>
    %103 = arith.mulf %101, %102 : vector<24x1xf32>
    %104 = arith.addf %100, %103 : vector<24x1xf32>
    %105 = arith.subf %104, %97 : vector<24x1xf32>
    %cst_29 = arith.constant 1.000000e-07 : f32
    %106 = vector.broadcast %cst_29 : f32 to vector<24x1xf32>
    %107 = arith.addf %105, %106 : vector<24x1xf32>
    %108 = arith.divf %97, %107 : vector<24x1xf32>
    %cst_30 = arith.constant 1.000000e+00 : f32
    %109 = vector.broadcast %cst_30 : f32 to vector<24x1xf32>
    %110 = arith.subf %109, %108 : vector<24x1xf32>
    %c0_31 = arith.constant 0 : index
    %c56 = arith.constant 56 : index
    %111 = vector.load %arg4[%c0_31, %c56] : memref<24x128xf32, #tpu.memory_space<vmem>>, vector<24x1xf32>
    %112 = vector.extract_strided_slice %6 {offsets = [0, 56], sizes = [24, 1], strides = [1, 1]} : vector<24x128xf32> to vector<24x1xf32>
    %113 = arith.mulf %110, %112 : vector<24x1xf32>
    %114 = arith.addf %111, %113 : vector<24x1xf32>
    %c0_32 = arith.constant 0 : index
    %c56_33 = arith.constant 56 : index
    %115 = vector.load %arg4[%c0_32, %c56_33] : memref<24x128xf32, #tpu.memory_space<vmem>>, vector<24x1xf32>
    tpu.vector_store %arg4[%c0_32, %c56_33], %114 {strides = array<i32>} : memref<24x128xf32, #tpu.memory_space<vmem>>, vector<24x1xf32>,
    %116 = vector.extract_strided_slice %4 {offsets = [0, 60], sizes = [24, 12], strides = [1, 1]} : vector<24x128xf32> to vector<24x12xf32>
    %c0_34 = arith.constant 0 : index
    %c60 = arith.constant 60 : index
    %117 = vector.load %arg4[%c0_34, %c60] : memref<24x128xf32, #tpu.memory_space<vmem>>, vector<24x12xf32>
    %cst_35 = arith.constant 5.000000e-01 : f32
    %118 = vector.broadcast %cst_35 : f32 to vector<24x12xf32>
    %119 = arith.subf %116, %118 : vector<24x12xf32>
    %120 = arith.mulf %119, %119 : vector<24x12xf32>
    %121 = vector.extract_strided_slice %6 {offsets = [0, 60], sizes = [24, 12], strides = [1, 1]} : vector<24x128xf32> to vector<24x12xf32>
    %122 = arith.mulf %120, %121 : vector<24x12xf32>
    %123 = arith.addf %117, %122 : vector<24x12xf32>
    %c0_36 = arith.constant 0 : index
    %c60_37 = arith.constant 60 : index
    %124 = vector.load %arg4[%c0_36, %c60_37] : memref<24x128xf32, #tpu.memory_space<vmem>>, vector<24x12xf32>
    tpu.vector_store %arg4[%c0_36, %c60_37], %123 {strides = array<i32>} : memref<24x128xf32, #tpu.memory_space<vmem>>, vector<24x12xf32>,
    %c5_i32 = arith.constant 5 : i32
    %125 = arith.cmpi eq, %arg0, %c5_i32 : i32
    %126 = arith.extui %125 : i1 to i32
    %c0_i32_38 = arith.constant 0 : i32
    %127 = arith.cmpi ne, %126, %c0_i32_38 : i32
    scf.if %127 {
      %c0_39 = arith.constant 0 : index
      %c0_40 = arith.constant 0 : index
      %128 = vector.load %arg4[%c0_39, %c0_40] : memref<24x128xf32, #tpu.memory_space<vmem>>, vector<24x128xf32>
      %129 = vector.extract_strided_slice %128 {offsets = [0, 0], sizes = [24, 48], strides = [1, 1]} : vector<24x128xf32> to vector<24x48xf32>
      %130 = vector.shape_cast %129 : vector<24x48xf32> to vector<1x24x48xf32>
      %cst_41 = arith.constant dense<0.000000e+00> : vector<1xf32>
      %131 = vector.multi_reduction <add>, %130, %cst_41 [1, 2] : vector<1x24x48xf32> to vector<1xf32>
      %132 = vector.shape_cast %131 : vector<1xf32> to vector<1x1x1xf32>
      %133 = vector.extract %132[0, 0, 0] : f32 from vector<1x1x1xf32>
      %134 = vector.extract_strided_slice %128 {offsets = [0, 48], sizes = [24, 12], strides = [1, 1]} : vector<24x128xf32> to vector<24x12xf32>
      %135 = vector.shape_cast %134 : vector<24x12xf32> to vector<1x24x12xf32>
      %cst_42 = arith.constant dense<0.000000e+00> : vector<1xf32>
      %136 = vector.multi_reduction <add>, %135, %cst_42 [1, 2] : vector<1x24x12xf32> to vector<1xf32>
      %137 = vector.shape_cast %136 : vector<1xf32> to vector<1x1x1xf32>
      %138 = vector.extract %137[0, 0, 0] : f32 from vector<1x1x1xf32>
      %139 = vector.extract_strided_slice %128 {offsets = [0, 60], sizes = [24, 12], strides = [1, 1]} : vector<24x128xf32> to vector<24x12xf32>
      %140 = vector.shape_cast %139 : vector<24x12xf32> to vector<1x24x12xf32>
      %cst_43 = arith.constant dense<0.000000e+00> : vector<1xf32>
      %141 = vector.multi_reduction <add>, %140, %cst_43 [1, 2] : vector<1x24x12xf32> to vector<1xf32>
      %142 = vector.shape_cast %141 : vector<1xf32> to vector<1x1x1xf32>
      %143 = vector.extract %142[0, 0, 0] : f32 from vector<1x1x1xf32>
      %144 = arith.addf %133, %138 : f32
      %145 = arith.addf %144, %143 : f32
      %c0_44 = arith.constant 0 : index
      %c0_45 = arith.constant 0 : index
      %146 = memref.load %arg3[%c0_44, %c0_45] : memref<1x4xf32, #tpu.memory_space<smem>>
      memref.store %145, %arg3[%c0_44, %c0_45] : memref<1x4xf32, #tpu.memory_space<smem>>
      %c0_46 = arith.constant 0 : index
      %c1 = arith.constant 1 : index
      %147 = memref.load %arg3[%c0_46, %c1] : memref<1x4xf32, #tpu.memory_space<smem>>
      memref.store %138, %arg3[%c0_46, %c1] : memref<1x4xf32, #tpu.memory_space<smem>>
      %c0_47 = arith.constant 0 : index
      %c2 = arith.constant 2 : index
      %148 = memref.load %arg3[%c0_47, %c2] : memref<1x4xf32, #tpu.memory_space<smem>>
      memref.store %133, %arg3[%c0_47, %c2] : memref<1x4xf32, #tpu.memory_space<smem>>
      %c0_48 = arith.constant 0 : index
      %c3 = arith.constant 3 : index
      %149 = memref.load %arg3[%c0_48, %c3] : memref<1x4xf32, #tpu.memory_space<smem>>
      memref.store %143, %arg3[%c0_48, %c3] : memref<1x4xf32, #tpu.memory_space<smem>>
    } else {
    }
    return
  }
  func.func @transform_0(%arg0: i32) -> (i32, i32, i32) {
    %c0_i32 = arith.constant 0 : i32
    %c0_i32_0 = arith.constant 0 : i32
    %c0_i32_1 = arith.constant 0 : i32
    return %arg0, %c0_i32, %c0_i32_0 : i32, i32, i32
  }
  func.func @transform_1(%arg0: i32) -> (i32, i32, i32) {
    %c0_i32 = arith.constant 0 : i32
    %c0_i32_0 = arith.constant 0 : i32
    %c0_i32_1 = arith.constant 0 : i32
    return %arg0, %c0_i32, %c0_i32_0 : i32, i32, i32
  }
  func.func @transform_2(%arg0: i32) -> (i32, i32) {
    %c0_i32 = arith.constant 0 : i32
    %c0_i32_0 = arith.constant 0 : i32
    %c0_i32_1 = arith.constant 0 : i32
    return %c0_i32, %c0_i32_0 : i32, i32
  }
}

</mosaic_0001>

<bundles_post_ra>
// kernel: tpu_custom_call.1
= control target key start
LH: loop header
LB: loop body
LE: loop exit
PB: predicated region body
PF: predicated region fallthrough
CT: control target
= control target key end

     0   :  { %7 = vsyncpa [#allocation4], 0  ;;  %s1194_s0 = inlined_call_operand.hbm [shape: f32[6,24,128], index: 0, kind: input, shape index: {}]   ;;  %s1195_s1 = inlined_call_operand.hbm [shape: f32[6,24,128], index: 1, kind: input, shape index: {}]   ;;  %s1196_s2 = inlined_call_operand.hbm [shape: f32[1,4], index: 2, kind: output, shape index: {}]  }
   0x1   :  { %9 = vsyncpa [#allocation4 + $0x1], 0 }
   0x2   :  { %10 = vsyncpa [#allocation7], 0 }
   0x3   :  { %12 = vsyncpa [#allocation7 + $0x1], 0 }
   0x4   :  { %13 = vsyncpa [#allocation5], 0  ;;  %s911_s9 = smov 0   ;;  %s913_s10 = smov 0  }
   0x5   :  { %s915_s11 = smov 0   ;;  %s917_s12 = smov 0  }
   0x6 LB: > { %s930_s13 = sadd.s32 4294967295, %s880_s12   ;;  %s933_s14 = sadd.s32 1, %s880_s12   ;;  %s880_s12 = sphi %s917_s12, %s1206_s12   ;;  %s876_s11 = sphi %s915_s11, %s1205_s11   ;;  %s872_s10 = sphi %s913_s10, %s1204_s10   ;;  %s868_s9 = sphi %s911_s9, %s1203_s9  }
   0x7   : > { %s23_s15 = ssub.s32 %s880_s12, %s933_s14  ;;  %s26_s16 = sadd.s32 1, %s876_s11 }
   0x8   : > { %p24_p0 = scmp.eq.s32.totalorder %s23_s15, 0  ;;  %p33_p1 = scmp.ne.s32.totalorder %s876_s11, %s872_s10 }
   0x9   : > { %p34_p2 = scmp.eq.s32.totalorder %s880_s12, 0  ;;  %p39_p3 = scmp.ne.s32.totalorder %s872_s10, %s868_s9 }
   0xa   : > { %s943_s17 = scalar_select %p24_p0, %s876_s11, %s26_s16  }
   0xb   : > { %p35_p4 = por %p34_p2, %p33_p1  ;;  %p40_p5 = scmp.eq.s32.totalorder %s930_s13, 0 }
   0xc   : > { %p701_p6 = scmp.lt.s32.totalorder %s880_s12, 6  ;;  %s952_s19 = sand.u32 1, %s876_s11  }
   0xd   : > { %p947_p7 = por %p40_p5, %p39_p3  ;;  %s675_s20 = smul.u32 24, %s952_s19 }
   0xe   : > { %s676_s21 = smul.u32 384, %s880_s12  ;;  %p956_p8 = pnand %p701_p6, %p35_p4 }
   0xf   : > { %s1198_s18 = scalar_select %p947_p7, 1, 0 }
  0x10   : > { %s965_s25 = scalar_lea.hbm %s1194_s0, %s676_s21  ;;  %s114_s26 = scalar_lea.vmem [#allocation3], %s675_s20 }
  0x11   : > { %s121_s27 = sshll.u32 %s114_s26, 4  ;;  %s111_s28 = scalar_lea.sflag [#allocation4], %s952_s19  ;;  %s969_s27 = int_to_ptr.vmem [resolvable:$true] %s121_s27 }
  0x12   : > { %s766_s29 = scalar_lea.hbm %s965_s25, 384  ;;  %p768_p11 = pneg %p956_p8 }
  0x13   : > { %p767_p10 = scmp.ne.s32.totalorder %s965_s25, %s766_s29  ;;  %s771_s4 = scalar_lea.hbm %s1194_s0, 2304 }
  0x14   : > { %p772_p0 = scmp.lt.u32.totalorder %s965_s25, %s1194_s0  ;;  %p773_p1 = scmp.lt.u32.totalorder %s771_s4, %s766_s29 }
  0x15   : > { %p769_p12 = pnand %p768_p11, %p767_p10  ;;  %p775_p3 = scmp.lt.u32.totalorder %s766_s29, %s965_s25 }
  0x16   : > { %p774_p2 = por %p773_p1, %p772_p0 }
  0x17   : > { %p770_p13 = pneg %p769_p12 }
  0x18   : > { %p776_p4 = por %p775_p3, %p774_p2 }
  0x1a   : > { %p777_p5 = pnand %p776_p4, %p770_p13 }
  0x1c   : > { %780 = shalt.err (!%p777_p5)
}
  0x1d   : > { %s781_s7 = scalar_lea.vmem %s969_s27, 384  ;;  %s882_s8 = smov [#allocation3]  }
  0x1e   : > { %p782_p6 = scmp.ne.s32.totalorder %s969_s27, %s781_s7  ;;  %s786_s9 = sshll.u32 %s882_s8, 4  ;;  %s787_s9 = int_to_ptr.vmem [resolvable:$false] %s786_s9 }
  0x1f   : > { %s788_s15 = scalar_lea.vmem %s787_s9, 768  ;;  %p789_p9 = scmp.lt.s32.totalorder %s969_s27, %s787_s9 }
  0x20   : > { %p784_p10 = pnand %p782_p6, %p768_p11  ;;  %p790_p0 = scmp.lt.s32.totalorder %s788_s15, %s781_s7 }
  0x22   : > { %p785_p12 = pneg %p784_p10  ;;  %p791_p1 = por %p790_p0, %p789_p9 }
  0x24   : > { %p792_p2 = pnand %p791_p1, %p785_p12 }
  0x26   : > { %795 = shalt.err (!%p792_p2)
}
  0x27   : > { %s883_s16 = smov 128   ;;  %s884_s23 = smov 8  }
  0x28   : > { %697 = dma.hbm_to_vmem [thread:$0]  (!%p956_p8), %s965_s25, 384, %s969_s27, %s111_s28, %s883_s16, %s883_s16, %s884_s23  }
  0x29   : > { %p150_p9 = scmp.lt.s32.totalorder %s880_s12, 7  ;;  %s1009_s29 = scalar_lea.hbm %s1195_s1, %s676_s21 }
  0x2a   : > { %p1200_p13 = scmp.ge.s32.totalorder %s880_s12, 1  ;;  %s135_s3 = scalar_lea.vmem [#allocation6], %s675_s20 }
  0x2b   : > { %s142_s4 = sshll.u32 %s135_s3, 4  ;;  %s132_s25 = scalar_lea.sflag [#allocation7], %s952_s19  ;;  %s1019_s4 = int_to_ptr.vmem [resolvable:$true] %s142_s4 }
  0x2c   : > { %p1013_p3 = pnand %p1200_p13, %p150_p9  ;;  %s796_s27 = scalar_lea.hbm %s1009_s29, 384 }
  0x2d   : > { %p797_p4 = scmp.ne.s32.totalorder %s1009_s29, %s796_s27  ;;  %s801_s28 = scalar_lea.hbm %s1195_s1, 2304 }
  0x2e   : > { %p802_p10 = scmp.lt.u32.totalorder %s1009_s29, %s1195_s1  ;;  %p803_p12 = scmp.lt.u32.totalorder %s801_s28, %s796_s27 }
  0x2f   : > { %p799_p5 = pnand %p797_p4, %p768_p11  ;;  %p805_p1 = scmp.lt.u32.totalorder %s796_s27, %s1009_s29 }
  0x30   : > { %p804_p0 = por %p803_p12, %p802_p10 }
  0x31   : > { %p800_p6 = pneg %p799_p5 }
  0x32   : > { %p806_p2 = por %p805_p1, %p804_p0 }
  0x34   : > { %p807_p9 = pnand %p806_p2, %p800_p6 }
  0x36   : > { %810 = shalt.err (!%p807_p9)
}
  0x37   : > { %s811_s20 = scalar_lea.vmem %s1019_s4, 384  ;;  %s885_s7 = smov [#allocation6]  }
  0x38   : > { %p812_p13 = scmp.ne.s32.totalorder %s1019_s4, %s811_s20  ;;  %s816_s8 = sshll.u32 %s885_s7, 4  ;;  %s817_s8 = int_to_ptr.vmem [resolvable:$false] %s816_s8 }
  0x39   : > { %s818_s9 = scalar_lea.vmem %s817_s8, 768  ;;  %p819_p7 = scmp.lt.s32.totalorder %s1019_s4, %s817_s8 }
  0x3a   : > { %p814_p4 = pnand %p812_p13, %p768_p11  ;;  %p820_p10 = scmp.lt.s32.totalorder %s818_s9, %s811_s20 }
  0x3c   : > { %p815_p5 = pneg %p814_p4  ;;  %p821_p12 = por %p820_p10, %p819_p7 }
  0x3e   : > { %p822_p0 = pnand %p821_p12, %p815_p5 }
  0x40   : > { %825 = shalt.err (!%p822_p0)
}
  0x41   : > { %700 = dma.hbm_to_vmem [thread:$0]  (!%p956_p8), %s1009_s29, 384, %s1019_s4, %s132_s25, %s883_s16, %s883_s16, %s884_s23  }
  0x42   : > { %154 = sbr.rel (%p1013_p3) target bundleno = 963 (0x3c3), region = 28  ;;  %s156_s15 = sand.u32 (!%p1013_p3), 1, %s872_s10  }
  0x43   : > { %s679_s24 = smul.u32 (!%p1013_p3), 24, %s156_s15  ;;  %s157_s26 = scalar_lea.sflag (!%p1013_p3), [#allocation4], %s156_s15 }
  0x44   : > { %p1202_p7 = scmp.ne.s32.totalorder (!%p1013_p3), %s1198_s18, 0 }
  0x45   : > { %s160_s3 = scalar_lea.vmem (!%p1013_p3), [#allocation3], %s679_s24 }
  0x49   : > { %855 = dma.done.wait (%p1202_p7), %s157_s26, 384  }
  0x4a   : > { %857 = vsyncadd (%p1202_p7), %s157_s26, 4294966912  ;;  %s166_s22 = scalar_lea.sflag [#allocation7], %s156_s15  ;;  %s1057_s19 = scalar_lea.vmem [#allocation6], %s679_s24 }
  0x4b   : > { %859 = dma.done.wait (%p1202_p7), %s166_s22, 384  }
  0x4c   : > { %861 = vsyncadd (%p1202_p7), %s166_s22, 4294966912  ;;  %p666_p8 = scmp.ne.s32.totalorder %s930_s13, 0 }
  0x4d   : > { %v886_v0 = vmov (!%p666_p8), 0.0  }
  0x4e   : > { %193 = sbr.rel (%p666_p8) target bundleno = 85 (0x55), region = 40  ;;  %194 = vst [vmem:[#allocation2] sm:$0xff] (!%p666_p8), %v886_v0  ;;  %195 = vst [vmem:[#allocation2 + $0x8] sm:$0xff] (!%p666_p8), %v886_v0 }
  0x4f   : > { %196 = vst [vmem:[#allocation2 + $0x10] sm:$0xff] (!%p666_p8), %v886_v0 }
  0x55 PF: > { %v1064_v1 = vld [vmem:[%s160_s3] sm:$0xff]  ;;  %v1066_v2 = vld [vmem:[%s160_s3 + $0x10] sm:$0xff]  ;;  %v1068_v3 = vld [vmem:[%s160_s3 + $0x8] sm:$0xff]  ;;  %s887_s18 = smov 126   ;;  %s888_s16 = smov 124   ;;  %vm275_vm3 = vcmask 130048  }
  0x56   : > { %v323_v4 = vmul.f32 0.5, %v1064_v1  ;;  %v325_v5 = vmul.f32 0.5, %v1066_v2  ;;  %v324_v6 = vmul.f32 0.5, %v1068_v3  ;;  %s889_s23 = smov 127   ;;  %v1101_v43 = vld [vmem:[%s1057_s19] sm:$0xff]  ;;  %v1104_v44 = vld [vmem:[%s1057_s19 + $0x8] sm:$0xff] }
  0x57   : > { %s890_s29 = smov 120   ;;  %v1109_v45 = vld [vmem:[%s1057_s19 + $0x10] sm:$0xff]  ;;  %s891_s30 = smov 112   ;;  %v224_v46 = vand.u32 2147483647, %v1064_v1  ;;  %vm291_vm4 = vcmask 392448  }
  0x58   : > { %329 = vrot.lane.b32.xlu0 %v323_v4, %s887_s18  ;;  %333 = vrot.lane.b32.xlu1 %v325_v5, %s887_s18  ;;  %v226_v48 = vand.u32 2147483647, %v1066_v2  ;;  %v225_v49 = vand.u32 2147483647, %v1068_v3  ;;  %s892_s4 = smov 8   ;;  %vm319_vm5 = vcmask 425344  }
  0x59   : > { %v227_v47 = vsub.f32 0.0, %v224_v46  ;;  %vm476_vm6 = vcmask 466368   ;;  %vm495_vm7 = vcmask 589280   ;;  %p670_p11 = scmp.ne.s32.totalorder %s930_s13, 5 }
  0x5a   : > { %v229_v51 = vsub.f32 0.0, %v226_v48  ;;  %v228_v52 = vsub.f32 0.0, %v225_v49  ;;  %s893_s25 = smov (!%p670_p11), 80   ;;  %s894_s27 = smov (!%p670_p11), 68   ;;  %vm506_vm8 = vcmask (!%p670_p11), 392192   ;;  %vm533_vm9 = vcmask (!%p670_p11), 97280  }
  0x5b   : > { %v230_v50 = vmul.f32 1.442695, %v227_v47 }
  0x5c   : > { %331 = vrot.lane.b32.xlu0 %v324_v6, %s887_s18  ;;  %v234_v53 = vmul.f32 1.442695, %v229_v51  ;;  %v232_v54 = vmul.f32 1.442695, %v228_v52 }
  0x5d   : > { %748 = vpow2.f32 %v230_v50  ;;  %v204_v50 = vmax.f32 %v1068_v3, 0.0 }
  0x5e   : > { %750 = vpow2.f32 %v234_v53 }
  0x5f   : > { %752 = vpow2.f32 %v232_v54 }
  0x67   : > { %v749_v55 = vpop.eup %748 }
  0x68   : > { %v236_v56 = vadd.f32 1.0, %v749_v55  ;;  %v751_v57 = vpop.eup %750 }
  0x69   : > { %v753_v58 = vpop.eup %752  ;;  %v254_v61 = vadd.f32 1.0, %v751_v57 }
  0x6a   : > { %754 = vlog2.f32 %v236_v56  ;;  %v245_v0 = vadd.f32 1.0, %v753_v58 }
  0x6b   : > { %756 = vlog2.f32 %v254_v61 }
  0x6c   : > { %758 = vlog2.f32 %v245_v0 }
  0xca   : > { %v330_v7 = vpop.permute.xlu0 %329  ;;  %v334_v8 = vpop.permute.xlu1 %333 }
  0xcb   : > { %v341_v9 = vadd.f32 %v330_v7, %v1064_v1  ;;  %v343_v10 = vadd.f32 %v334_v8, %v1066_v2  ;;  %v338_v13 = vsub.f32 %v1064_v1, %v330_v7  ;;  %v340_v15 = vsub.f32 %v1066_v2, %v334_v8 }
  0xcc   : > { %v239_v7 = vmul.f32 -0.5, %v749_v55 }
  0xcd   : > { %347 = vrot.lane.b32.xlu1 %v341_v9, %s888_s16  ;;  %v395_v16 = vsub.f32 %v341_v9, %v338_v13  ;;  %v397_v17 = vsub.f32 %v343_v10, %v340_v15 }
  0xce   : > { %v332_v11 = vpop.permute.xlu0 %331 }
  0xcf   : > { %v342_v12 = vadd.f32 %v332_v11, %v1068_v3  ;;  %v339_v14 = vsub.f32 %v1068_v3, %v332_v11  ;;  %v240_v11 = vadd.f32 1.0, %v239_v7 }
  0xd1   : > { %351 = vrot.lane.b32.xlu1 %v343_v10, %s888_s16  ;;  %349 = vrot.lane.b32.xlu0 %v342_v12, %s888_s16  ;;  %v396_v18 = vsub.f32 %v342_v12, %v339_v14 }
  0xd5   : > { %362 = vrot.lane.b32.xlu0 %v338_v13, %s888_s16  ;;  %364 = vrot.lane.b32.xlu1 %v339_v14, %s888_s16 }
  0xd9   : > { %366 = vrot.lane.b32.xlu0 %v340_v15, %s888_s16  ;;  %401 = vrot.lane.b32.xlu1 %v395_v16, %s889_s23 }
  0xdd   : > { %405 = vrot.lane.b32.xlu1 %v397_v17, %s889_s23  ;;  %403 = vrot.lane.b32.xlu0 %v396_v18, %s889_s23 }
 0x13f   : > { %v348_v19 = vpop.permute.xlu1 %347 }
 0x140   : > { %v356_v24 = vmin.f32 %v341_v9, %v348_v19  ;;  %v248_v19 = vmul.f32 -0.5, %v753_v58 }
 0x143   : > { %v352_v20 = vpop.permute.xlu1 %351  ;;  %v350_v21 = vpop.permute.xlu0 %349 }
 0x144   : > { %v357_v27 = vmin.f32 %v342_v12, %v350_v21  ;;  %v358_v29 = vmin.f32 %v343_v10, %v352_v20  ;;  %v257_v12 = vmul.f32 -0.5, %v751_v57 }
 0x147   : > { %v363_v22 = vpop.permute.xlu0 %362  ;;  %v365_v23 = vpop.permute.xlu1 %364 }
 0x148   : > { %v371_v25 = vmax.f32 %v338_v13, %v363_v22  ;;  %v372_v26 = vmax.f32 %v339_v14, %v365_v23 }
 0x14a   : > { %v374_v28 = vsub.f32 %v356_v24, %v371_v25  ;;  %v1088_v33 = vsub.f32 %v357_v27, %v372_v26  ;;  %v258_v24 = vadd.f32 1.0, %v257_v12 }
 0x14b   : > { %v367_v30 = vpop.permute.xlu0 %366  ;;  %v402_v31 = vpop.permute.xlu1 %401 }
 0x14c   : > { %v377_v32 = vmax.f32 %v374_v28, 0.0  ;;  %v373_v34 = vmax.f32 %v340_v15, %v367_v30  ;;  %v410_v35 = vmul.f32 %v402_v31, %v395_v16  ;;  %v378_v37 = vmax.f32 %v1088_v33, 0.0 }
 0x14d   : > { %v241_v28 = vmul.f32 %v749_v55, %v240_v11  ;;  %v249_v30 = vadd.f32 1.0, %v248_v19  ;;  %v260_v33 = vand.u32 2147483647, %v751_v57 }
 0x14e   : > { %v1090_v36 = vsub.f32 %v358_v29, %v373_v34  ;;  %416 = vrot.lane.b32.xlu1 %v410_v35, %s888_s16  ;;  %383 = vrot.lane.b32.xlu0 %v377_v32, %s889_s23  ;;  %v251_v34 = vand.u32 2147483647, %v753_v58 }
 0x14f   : > { %v406_v39 = vpop.permute.xlu1 %405  ;;  %v404_v40 = vpop.permute.xlu0 %403  ;;  %v250_v48 = vmul.f32 %v753_v58, %v249_v30  ;;  %vm261_vm1 = vcmp.lt.f32.partialorder %v260_v33, 0.0004427343 }
 0x150   : > { %v379_v38 = vmax.f32 %v1090_v36, 0.0  ;;  %v412_v41 = vmul.f32 %v406_v39, %v397_v17  ;;  %v411_v42 = vmul.f32 %v404_v40, %v396_v18  ;;  %v755_v17 = vpop.eup %754  ;;  %v242_v18 = vand.u32 2147483647, %v749_v55 }
 0x151   : > { %v238_v27 = vmul.f32 0.6931472, %v755_v17  ;;  %v757_v29 = vpop.eup %756  ;;  %v205_v40 = vmax.f32 %v1066_v2, 0.0  ;;  %vm252_vm2 = vcmp.lt.f32.partialorder %v251_v34, 0.0004427343 }
 0x152   : > { %385 = vrot.lane.b32.xlu1 %v378_v37, %s889_s23  ;;  %387 = vrot.lane.b32.xlu0 %v379_v38, %s889_s23  ;;  %vm243_vm0 = vcmp.lt.f32.partialorder %v242_v18, 0.0004427343  ;;  %v759_v31 = vpop.eup %758  ;;  %v256_v46 = vmul.f32 0.6931472, %v757_v29 }
 0x153   : > { %v244_v39 = vsel %vm243_vm0, %v241_v28, %v238_v27  ;;  %v247_v47 = vmul.f32 0.6931472, %v759_v31 }
 0x155   : > { %v253_v61 = vsel %vm252_vm2, %v250_v48, %v247_v47 }
 0x156   : > { %420 = vrot.lane.b32.xlu1 %v412_v41, %s888_s16  ;;  %418 = vrot.lane.b32.xlu0 %v411_v42, %s888_s16 }
 0x15a   : > { %449 = vrot.lane.b32.xlu0 %v1101_v43, %s890_s29  ;;  %451 = vrot.lane.b32.xlu1 %v1104_v44, %s890_s29 }
 0x15e   : > { %453 = vrot.lane.b32.xlu0 %v1109_v45, %s890_s29  ;;  %209 = vrot.lane.b32.xlu1 %v1064_v1, %s891_s30 }
 0x162   : > { %213 = vrot.lane.b32.xlu1 %v1066_v2, %s891_s30  ;;  %211 = vrot.lane.b32.xlu0 %v1068_v3, %s891_s30 }
 0x166   : > { %298 = vrot.lane.b32.xlu0 %v1064_v1, %s888_s16  ;;  %300 = vrot.lane.b32.xlu1 %v1068_v3, %s888_s16 }
 0x16a   : > { %302 = vrot.lane.b32.xlu0 %v1066_v2, %s888_s16 }
 0x1c0   : > { %v417_v59 = vpop.permute.xlu1 %416  ;;  %v384_v60 = vpop.permute.xlu0 %383 }
 0x1c1   : > { %v425_v62 = vadd.f32 %v417_v59, %v410_v35  ;;  %v392_v63 = vmul.f32 %v384_v60, %v377_v32  ;;  %v203_v32 = vmax.f32 %v1064_v1, 0.0  ;;  %v266_v60 = vld [vmem:[#allocation2] sm:$0xff] }
 0x1c3   : > { %v428_v4 = vsub.f32 %v425_v62, %v392_v63  ;;  %v279_v12 = vadd.f32 %v244_v39, %v203_v32 }
 0x1c4   : > { %v386_v5 = vpop.permute.xlu1 %385  ;;  %v388_v6 = vpop.permute.xlu0 %387 }
 0x1c5   : > { %v431_v8 = vadd.f32 1e-07, %v428_v4  ;;  %v1124_v13 = vmul.f32 %v386_v5, %v378_v37  ;;  %v394_v14 = vmul.f32 %v388_v6, %v379_v38 }
 0x1c7   : > { %760 = vrcp.f32 %v431_v8 }
 0x1c8   : > { %v421_v9 = vpop.permute.xlu1 %420  ;;  %v419_v10 = vpop.permute.xlu0 %418 }
 0x1c9   : > { %v427_v15 = vadd.f32 %v421_v9, %v412_v41  ;;  %v426_v16 = vadd.f32 %v419_v10, %v411_v42  ;;  %v259_v41 = vmul.f32 %v751_v57, %v258_v24  ;;  %v268_v9 = vld [vmem:[#allocation2 + $0x10] sm:$0xff]  ;;  %v267_v10 = vld [vmem:[#allocation2 + $0x8] sm:$0xff] }
 0x1cb   : > { %v430_v20 = vsub.f32 %v427_v15, %v394_v14  ;;  %v429_v21 = vsub.f32 %v426_v16, %v1124_v13  ;;  %v262_v57 = vsel %vm261_vm1, %v259_v41, %v256_v46 }
 0x1cc   : > { %v450_v22 = vpop.permute.xlu0 %449  ;;  %v1127_v23 = vpop.permute.xlu1 %451 }
 0x1cd   : > { %v433_v25 = vadd.f32 1e-07, %v430_v20  ;;  %v432_v26 = vadd.f32 1e-07, %v429_v21 }
 0x1cf   : > { %762 = vrcp.f32 %v433_v25  ;;  %v281_v25 = vadd.f32 %v262_v57, %v205_v40 }
 0x1d0   : > { %764 = vrcp.f32 %v432_v26  ;;  %v454_v35 = vpop.permute.xlu0 %453  ;;  %v210_v36 = vpop.permute.xlu1 %209 }
 0x1d1   : > { %v761_v37 = vpop.eup %760  ;;  %v218_v38 = vmul.f32 %v210_v36, %v1064_v1  ;;  %v287_v31 = vmul.f32 %v281_v25, %v1109_v45 }
 0x1d2   : > { %v435_v42 = vmul.f32 %v761_v37, %v392_v63 }
 0x1d3   : > { %v221_v49 = vsub.f32 %v203_v32, %v218_v38 }
 0x1d4   : > { %v440_v51 = vsub.f32 1.0, %v435_v42  ;;  %v214_v52 = vpop.permute.xlu1 %213  ;;  %v212_v53 = vpop.permute.xlu0 %211 }
 0x1d5   : > { %v263_v54 = vadd.f32 %v244_v39, %v221_v49  ;;  %v220_v55 = vmul.f32 %v214_v52, %v1066_v2  ;;  %v219_v56 = vmul.f32 %v212_v53, %v1068_v3 }
 0x1d6   : > { %v458_v59 = vmul.f32 %v450_v22, %v440_v51 }
 0x1d7   : > { %v269_v62 = vmul.f32 %v263_v54, %v1101_v43  ;;  %v223_v58 = vsub.f32 %v205_v40, %v220_v55  ;;  %v222_v63 = vsub.f32 %v204_v50, %v219_v56  ;;  %v667_v54 = vadd.f32 -0.5, %v1064_v1 }
 0x1d8   : > { %464 = vrot.lane.b32.xlu1 %v458_v59, %s892_s4  ;;  %v299_v22 = vpop.permute.xlu0 %298  ;;  %v301_v28 = vpop.permute.xlu1 %300 }
 0x1d9   : > { %v763_v0 = vpop.eup %762  ;;  %v272_v4 = vadd.f32 %v269_v62, %v266_v60  ;;  %v265_v5 = vadd.f32 %v262_v57, %v223_v58  ;;  %v264_v6 = vadd.f32 %v253_v61, %v222_v63  ;;  %v307_v26 = vsub.f32 %v1064_v1, %v299_v22 }
 0x1da   : > { %v765_v7 = vpop.eup %764  ;;  %v439_v8 = vmul.f32 %v763_v0, %v394_v14  ;;  %v285_v14 = vmul.f32 %v279_v12, %v1101_v43  ;;  %v308_v33 = vsub.f32 %v1068_v3, %v301_v28  ;;  %v486_v59 = vmul.f32 %v667_v54, %v667_v54 }
 0x1db   : > { %v437_v11 = vmul.f32 %v765_v7, %v1124_v13  ;;  %276 = vst.msk [vmem:[#allocation2] sm:$0xff] %vm275_vm3, %v272_v4  ;;  %v271_v15 = vmul.f32 %v265_v5, %v1109_v45  ;;  %v270_v16 = vmul.f32 %v264_v6, %v1104_v44  ;;  %v280_v13 = vadd.f32 %v253_v61, %v204_v50 }
 0x1dc   : > { %v442_v17 = vsub.f32 1.0, %v439_v8  ;;  %v303_v29 = vpop.permute.xlu0 %302  ;;  %v310_v32 = vmul.f32 %v307_v26, %v307_v26  ;;  %v311_v40 = vmul.f32 %v308_v33, %v308_v33  ;;  %v489_v57 = vmul.f32 %v486_v59, %v1101_v43 }
 0x1dd   : > { %v441_v18 = vsub.f32 1.0, %v437_v11  ;;  %v274_v19 = vadd.f32 %v271_v15, %v268_v9  ;;  %v273_v20 = vadd.f32 %v270_v16, %v267_v10  ;;  %v309_v34 = vsub.f32 %v1066_v2, %v303_v29 }
 0x1de   : > { %v460_v21 = vmul.f32 %v454_v35, %v442_v17  ;;  %v313_v39 = vmul.f32 %v310_v32, %v1101_v43  ;;  %v314_v47 = vmul.f32 %v311_v40, %v1104_v44  ;;  %v669_v61 = vadd.f32 -0.5, %v1066_v2 }
 0x1df   : > { %v459_v24 = vmul.f32 %v1127_v23, %v441_v18  ;;  %278 = vst.msk [vmem:[#allocation2 + $0x10] sm:$0xff] %vm275_vm3, %v274_v19  ;;  %277 = vst.msk [vmem:[#allocation2 + $0x8] sm:$0xff] %vm275_vm3, %v273_v20  ;;  %v286_v23 = vmul.f32 %v280_v13, %v1104_v44  ;;  %v312_v41 = vmul.f32 %v309_v34, %v309_v34  ;;  %v668_v58 = vadd.f32 -0.5, %v1068_v3 }
 0x1e0   : > { %468 = vrot.lane.b32.xlu1 %v460_v21, %s892_s4  ;;  %v488_v6 = vmul.f32 %v669_v61, %v669_v61 }
 0x1e1   : > { %466 = vrot.lane.b32.xlu0 %v459_v24, %s892_s4  ;;  %v315_v48 = vmul.f32 %v312_v41, %v1109_v45  ;;  %v487_v8 = vmul.f32 %v668_v58, %v668_v58 }
 0x1e2   : > { %v282_v27 = vld [vmem:[#allocation2] sm:$0xff]  ;;  %v491_v2 = vmul.f32 %v488_v6, %v1109_v45 }
 0x1e3   : > { %v288_v30 = vadd.f32 %v285_v14, %v282_v27  ;;  %v490_v43 = vmul.f32 %v487_v8, %v1104_v44 }
 0x1e5   : > { %292 = vst.msk [vmem:[#allocation2] sm:$0xff] %vm291_vm4, %v288_v30 }
 0x1e6   : > { %v284_v35 = vld [vmem:[#allocation2 + $0x10] sm:$0xff]  ;;  %v283_v36 = vld [vmem:[#allocation2 + $0x8] sm:$0xff] }
 0x1e7   : > { %v290_v37 = vadd.f32 %v287_v31, %v284_v35  ;;  %v289_v38 = vadd.f32 %v286_v23, %v283_v36 }
 0x1e9   : > { %294 = vst.msk [vmem:[#allocation2 + $0x10] sm:$0xff] %vm291_vm4, %v290_v37  ;;  %293 = vst.msk [vmem:[#allocation2 + $0x8] sm:$0xff] %vm291_vm4, %v289_v38 }
 0x1ec   : > { %v295_v42 = vld [vmem:[#allocation2] sm:$0xff] }
 0x1ed   : > { %v316_v46 = vadd.f32 %v313_v39, %v295_v42 }
 0x1ef   : > { %320 = vst.msk [vmem:[#allocation2] sm:$0xff] %vm319_vm5, %v316_v46 }
 0x1f0   : > { %v296_v49 = vld [vmem:[#allocation2 + $0x8] sm:$0xff]  ;;  %v297_v50 = vld [vmem:[#allocation2 + $0x10] sm:$0xff] }
 0x1f1   : > { %v317_v51 = vadd.f32 %v314_v47, %v296_v49  ;;  %v318_v52 = vadd.f32 %v315_v48, %v297_v50 }
 0x1f3   : > { %321 = vst.msk [vmem:[#allocation2 + $0x8] sm:$0xff] %vm319_vm5, %v317_v51  ;;  %322 = vst.msk [vmem:[#allocation2 + $0x10] sm:$0xff] %vm319_vm5, %v318_v52 }
 0x1f6   : > { %v443_v53 = vld [vmem:[#allocation2] sm:$0xff] }
 0x1fa   : > { %v445_v60 = vld [vmem:[#allocation2 + $0x10] sm:$0xff]  ;;  %v444_v62 = vld [vmem:[#allocation2 + $0x8] sm:$0xff] }
 0x24a   : > { %v465_v55 = vpop.permute.xlu1 %464 }
 0x24b   : > { %v473_v56 = vadd.f32 %v465_v55, %v443_v53 }
 0x24d   : > { %477 = vst.msk [vmem:[#allocation2] sm:$0xff] %vm476_vm6, %v473_v56 }
 0x252   : > { %v469_v63 = vpop.permute.xlu1 %468 }
 0x253   : > { %v475_v0 = vadd.f32 %v469_v63, %v445_v60  ;;  %v467_v4 = vpop.permute.xlu0 %466 }
 0x254   : > { %v480_v5 = vld [vmem:[#allocation2] sm:$0xff]  ;;  %v474_v1 = vadd.f32 %v467_v4, %v444_v62 }
 0x255   : > { %v492_v7 = vadd.f32 %v489_v57, %v480_v5  ;;  %479 = vst.msk [vmem:[#allocation2 + $0x10] sm:$0xff] %vm476_vm6, %v475_v0 }
 0x256   : > { %478 = vst.msk [vmem:[#allocation2 + $0x8] sm:$0xff] %vm476_vm6, %v474_v1 }
 0x257   : > { %496 = vst.msk [vmem:[#allocation2] sm:$0xff] %vm495_vm7, %v492_v7 }
 0x25a   : > { %502 = sbr.rel (%p670_p11) target bundleno = 948 (0x3b4), region = 44 }
 0x25c   : > { %v482_v3 = vld [vmem:[#allocation2 + $0x10] sm:$0xff] }
 0x25d   : > { %v494_v9 = vadd.f32 %v491_v2, %v482_v3  ;;  %v481_v10 = vld [vmem:[#allocation2 + $0x8] sm:$0xff] }
 0x25e   : > { %v493_v11 = vadd.f32 %v490_v43, %v481_v10  ;;  %v503_v12 = vld [vmem:[#allocation2] sm:$0xff] (!%p670_p11) }
 0x25f   : > { %498 = vst.msk [vmem:[#allocation2 + $0x10] sm:$0xff] %vm495_vm7, %v494_v9  ;;  %524 = vrot.lane.b32.xlu0 (!%p670_p11), %v503_v12, %s893_s25  ;;  %v507_v44 = vsel (!%p670_p11), %vm506_vm8, %v503_v12, 0.0 }
 0x260   : > { %497 = vst.msk [vmem:[#allocation2 + $0x8] sm:$0xff] %vm495_vm7, %v493_v11 }
 0x266   : > { %v505_v15 = vld [vmem:[#allocation2 + $0x10] sm:$0xff] }
 0x267   : > { %528 = vrot.lane.b32.xlu1 %v505_v15, %s893_s25  ;;  %v504_v16 = vld [vmem:[#allocation2 + $0x8] sm:$0xff]  ;;  %v510_v18 = vsel %vm506_vm8, %v505_v15, 0.0 }
 0x268   : > { %526 = vrot.lane.b32.xlu0 %v504_v16, %s893_s25  ;;  %v508_v45 = vsel %vm506_vm8, %v504_v16, 0.0 }
 0x269   : > { %v509_v17 = vadd.f32 %v508_v45, %v507_v44 }
 0x26b   : > { %548 = vrot.lane.b32.xlu1 %v503_v12, %s894_s27  ;;  %v511_v19 = vadd.f32 %v510_v18, %v509_v17 }
 0x26c   : > { %550 = vrot.lane.b32.xlu0 %v504_v16, %s894_s27 }
 0x26f   : > { %552 = vrot.lane.b32.xlu1 %v505_v15, %s894_s27 }
 0x28b   : > { %512 = vadd.xlane.f32.xlu0 %v511_v19 }
 0x2d1   : > { %v525_v20 = vpop.permute.xlu0 %524 }
 0x2d2   : > { %v534_v14 = vsel %vm533_vm9, %v525_v20, 0.0 }
 0x2d9   : > { %v529_v21 = vpop.permute.xlu1 %528 }
 0x2da   : > { %v527_v22 = vpop.permute.xlu0 %526  ;;  %v537_v26 = vsel %vm533_vm9, %v529_v21, 0.0 }
 0x2db   : > { %v535_v25 = vsel %vm533_vm9, %v527_v22, 0.0 }
 0x2dc   : > { %v536_v13 = vadd.f32 %v535_v25, %v534_v14 }
 0x2dd   : > { %v549_v24 = vpop.permute.xlu1 %548 }
 0x2de   : > { %v551_v27 = vpop.permute.xlu0 %550  ;;  %v538_v29 = vadd.f32 %v537_v26, %v536_v13  ;;  %v557_v30 = vsel %vm533_vm9, %v549_v24, 0.0 }
 0x2df   : > { %v558_v31 = vsel %vm533_vm9, %v551_v27, 0.0 }
 0x2e0   : > { %v559_v32 = vadd.f32 %v558_v31, %v557_v30  ;;  %539 = vadd.xlane.f32.xlu1 %v538_v29 }
 0x2e1   : > { %v553_v28 = vpop.permute.xlu1 %552 }
 0x2e2   : > { %v560_v23 = vsel %vm533_vm9, %v553_v28, 0.0 }
 0x2e3   : > { %v561_v33 = vadd.f32 %v560_v23, %v559_v32 }
 0x2e5   : > { %562 = vadd.xlane.f32.xlu0 %v561_v33 }
 0x318   : > { %v513_v34 = vpop.xlane.xlu0 %512 }
 0x319   : > { %v514_v35 = vrot.slane %v513_v34, 4 }
 0x31b   : > { %v515_v36 = vadd.f32 %v514_v35, %v513_v34 }
 0x31d   : > { %v516_v37 = vrot.slane %v515_v36, 2 }
 0x31f   : > { %v517_v38 = vadd.f32 %v516_v37, %v515_v36 }
 0x321   : > { %v518_v39 = vrot.slane %v517_v38, 1 }
 0x323   : > { %v519_v40 = vadd.f32 %v518_v39, %v517_v38 }
 0x325   : > { %680 = vpush %v519_v40 }
 0x356   : > { %s681_s12 = spop %680 }
 0x357   : > { %578 = sst [smem:[#allocation8 + $0x2]] %s681_s12 }
 0x36d   : > { %v540_v41 = vpop.xlane.xlu1 %539 }
 0x36e   : > { %v541_v42 = vrot.slane %v540_v41, 4 }
 0x370   : > { %v542_v46 = vadd.f32 %v541_v42, %v540_v41 }
 0x372   : > { %v563_v47 = vpop.xlane.xlu0 %562  ;;  %v543_v48 = vrot.slane %v542_v46, 2 }
 0x373   : > { %v564_v49 = vrot.slane %v563_v47, 4 }
 0x374   : > { %v544_v50 = vadd.f32 %v543_v48, %v542_v46 }
 0x375   : > { %v565_v51 = vadd.f32 %v564_v49, %v563_v47 }
 0x376   : > { %v545_v53 = vrot.slane %v544_v50, 1 }
 0x377   : > { %v566_v52 = vrot.slane %v565_v51, 2 }
 0x378   : > { %v546_v55 = vadd.f32 %v545_v53, %v544_v50 }
 0x379   : > { %v567_v54 = vadd.f32 %v566_v52, %v565_v51 }
 0x37a   : > { %682 = vpush %v546_v55 }
 0x37b   : > { %v568_v56 = vrot.slane %v567_v54, 1 }
 0x37d   : > { %v569_v59 = vadd.f32 %v568_v56, %v567_v54 }
 0x37f   : > { %684 = vpush %v569_v59 }
 0x3ab   : > { %s683_s21 = spop %682 }
 0x3ac   : > { %576 = sst [smem:[#allocation8 + $0x1]] %s683_s21 }
 0x3ad   : > { %s571_s28 = sadd.f32 %s683_s21, %s681_s12 }
 0x3b0   : > { %s685_s5 = spop %684 }
 0x3b1   : > { %s572_s6 = sadd.f32 %s685_s5, %s571_s28 }
 0x3b2   : > { %580 = sst [smem:[#allocation8 + $0x3]] %s685_s5 }
 0x3b3   : > { %574 = sst [smem:[#allocation8]] %s572_s6 }
 0x3b4 PF: > { %p702_p3 = scmp.eq.s32.totalorder %s930_s13, 5  ;;  %s826_s8 = scalar_lea.hbm %s1196_s2, 16 }
 0x3b5   : > { %p827_p6 = scmp.ne.s32.totalorder %s1196_s2, %s826_s8  ;;  %p832_p9 = scmp.lt.u32.totalorder %s826_s8, %s1196_s2 }
 0x3b7   : > { %p828_p1 = pnand %p827_p6, %p702_p3 }
 0x3b9   : > { %p829_p2 = pneg %p828_p1 }
 0x3bb   : > { %p834_p13 = pnand %p832_p9, %p829_p2 }
 0x3bd   : > { %837 = shalt.err (!%p834_p13)
}
 0x3be   : > { %s895_s3 = smov [#allocation8]  }
 0x3bf   : > { %691 = dma.smem_to_hbm (%p702_p3), %s895_s3, 16, %s1196_s2, [#allocation5]  }
 0x3c0   : > { %863 = dma.done.wait (%p702_p3), [#allocation5], 16  }
 0x3c1   : > { %865 = vsyncadd (%p702_p3), [#allocation5], 4294967280 }
 0x3c2   : > { %594 = sfence }
 0x3c3 PF: > { %p16_p4 = scmp.ge.s32.totalorder %s933_s14, 8   ;;  %s1203_s9 = smov %s872_s10 }
 0x3c4   : > { %s1204_s10 = smov %s876_s11  ;;  %s1205_s11 = smov %s943_s17 }
 0x3c5   : > { %s1206_s12 = smov %s933_s14  ;;  %18 = sbr.rel (!%p16_p4) target bundleno = 6 (0x6), region = 90 }
 0x3cc   :  { %600 = vsyncpa [#allocation4], 1 }
 0x3cd   :  { %602 = vsyncpa [#allocation4 + $0x1], 1 }
 0x3ce   :  { %603 = vsyncpa [#allocation7], 1 }
 0x3cf   :  { %605 = vsyncpa [#allocation7 + $0x1], 1 }
 0x3d0   :  { %606 = vsyncpa [#allocation5], 1 }
 0x3d1   :  { %608 = vsyncpa [#allocation5 + $0x1], 1 }

</bundles_post_ra>
